<compile_context>
chip_gen: v7x
topology: tpu7x:2x2x1
jax: 0.10.0
libtpu: 0.0.40
codegen_flags: <defaults>
</compile_context>

<pallas_src>
import functools

import jax
import jax.numpy as jnp
from jax.experimental import pallas as pl
from jax.experimental.pallas import tpu as pltpu

P_DROP = 0.1
KEEP_P = 1.0 - P_DROP
KEEP_THRESHOLD = int(KEEP_P * float(2 ** 32))  # keep element iff hash < threshold
LANES = 128
MAX_TILE_ROWS = 1024   # caps per-tile VMEM (1024*128*4B = 512 KiB per buffer, f32)
TARGET_TILES = 4       # small grid -> pipelined DMA without excess per-step overhead


def _cdiv(a, b):
    return -(-a // b)


def _round_up(a, b):
    return _cdiv(a, b) * b


def _splitmix32(h):
    """Bijective 32-bit mixer (splitmix32 finalizer). h: uint32 array."""
    h = h ^ (h >> 16)
    h = h * jnp.uint32(0x7FEB352D)
    h = h ^ (h >> 15)
    h = h * jnp.uint32(0x846CA68B)
    h = h ^ (h >> 16)
    return h


def _relu_dropout_kernel(seed_ref, x_ref, o_ref):
    """Fused ReLU + dropout on one (tile_rows, 128) tile."""
    tile_rows, lanes = x_ref.shape
    x = x_ref[...]
    y = jnp.maximum(x, jnp.zeros_like(x))  # ReLU

    # Counter-based RNG: hash(global element index, seed). Stateless, so each
    # grid tile (and each TensorCore under "parallel" semantics) gets an
    # independent dropout mask from a single scalar seed.
    i = pl.program_id(0)
    row = jax.lax.broadcasted_iota(jnp.int32, (tile_rows, lanes), 0)
    col = jax.lax.broadcasted_iota(jnp.int32, (tile_rows, lanes), 1)
    idx = (i * tile_rows + row) * lanes + col
    h = idx.astype(jnp.uint32) + seed_ref[0].astype(jnp.uint32) * jnp.uint32(0x9E3779B9)
    h = _splitmix32(h)
    keep = h < jnp.uint32(KEEP_THRESHOLD)

    scale = jnp.asarray(1.0 / KEEP_P, dtype=y.dtype)
    o_ref[...] = jnp.where(keep, y * scale, jnp.zeros_like(y))


@functools.partial(jax.jit, static_argnames=("training",))
def relu_dropout(x, seed, training=True):
    """x: NCHW array. seed: int32 scalar. Returns same shape/dtype as x."""
    if not training:
        # Dropout is identity in eval mode; a bare ReLU fuses better in XLA
        # than a standalone Pallas launch for a tiny elementwise op.
        return jnp.maximum(x, jnp.zeros_like(x))

    orig_shape = x.shape
    dtype = x.dtype
    n_elem = x.size

    # Flatten to a lane-dense (rows, 128) slab; pad the tail if needed.
    rows = _cdiv(n_elem, LANES)
    tile_rows = min(max(8, _round_up(_cdiv(rows, TARGET_TILES), 8)), MAX_TILE_ROWS)
    n_tiles = _cdiv(rows, tile_rows)
    rows_padded = n_tiles * tile_rows
    pad = rows_padded * LANES - n_elem

    flat = jnp.reshape(x, (-1,))
    if pad:
        flat = jnp.concatenate([flat, jnp.zeros((pad,), dtype=dtype)])
    x2d = jnp.reshape(flat, (rows_padded, LANES))

    seed_arr = jnp.reshape(jnp.asarray(seed, dtype=jnp.int32), (1,))

    out2d = pl.pallas_call(
        _relu_dropout_kernel,
        out_shape=jax.ShapeDtypeStruct((rows_padded, LANES), dtype),
        grid=(n_tiles,),
        in_specs=[
            pl.BlockSpec(memory_space=pltpu.MemorySpace.SMEM),    # seed scalar
            pl.BlockSpec((tile_rows, LANES), lambda i: (i, 0)),   # x tile
        ],
        out_specs=pl.BlockSpec((tile_rows, LANES), lambda i: (i, 0)),
        input_output_aliases={1: 0},  # write result in place of the x slab
        compiler_params=pltpu.CompilerParams(
            dimension_semantics=("parallel",)),
    )(seed_arr, x2d)

    out_flat = jnp.reshape(out2d, (-1,))
    if pad:
        out_flat = out_flat[:n_elem]
    return jnp.reshape(out_flat, orig_shape)


if __name__ == "__main__":
    key = jax.random.PRNGKey(0)
    # Shape from the module's forward: NCHW [1, 256, 28, 28].
    x = jax.random.normal(key, (1, 256, 28, 28), dtype=jnp.float32)

    out = jax.block_until_ready(relu_dropout(x, seed=0, training=True))

    # Sanity checks: shape/dtype preserved, ReLU non-negativity, dropout law.
    assert out.shape == x.shape and out.dtype == x.dtype
    assert bool(jnp.all(out >= 0.0))

    relu_x = jnp.maximum(x, 0.0)
    scaled = relu_x * jnp.float32(1.0 / KEEP_P)
    # Every output element is either 0 or relu(x)/(1-p).
    ok = jnp.all(
        jnp.isclose(out, 0.0, atol=1e-6)
        | jnp.isclose(out, scaled, rtol=1e-5, atol=1e-6)
    )
    assert bool(ok)

    # Drop rate over strictly-positive activations should be ~p.
    pos = relu_x > 0.0
    dropped_frac = jnp.sum((out == 0.0) & pos) / jnp.maximum(jnp.sum(pos), 1)
    assert 0.05 < float(dropped_frac) < 0.15

    # Eval-mode path (dropout = identity) matches plain ReLU exactly.
    out_eval = jax.block_until_ready(relu_dropout(x, seed=0, training=False))
    assert bool(jnp.all(out_eval == relu_x))

    print("KERNEL_OK")
</pallas_src>

<mosaic_0001>
module attributes {stable_mosaic.version = 11 : i64} {
  func.func @_relu_dropout_kernel(%arg0: i32, %arg1: memref<1xi32, #tpu.memory_space<smem>>, %arg2: memref<392x128xf32, #tpu.memory_space<vmem>>, %arg3: memref<392x128xf32, #tpu.memory_space<vmem>>) attributes {dimension_semantics = [#tpu.dimension_semantics<parallel>], iteration_bounds = array<i64: 4>, scalar_prefetch = 0 : i64, scratch_operands = 0 : i64, tpu.core_type = #tpu.core_type<tc>, window_params = [{transform_indices = @transform_0, window_bounds = array<i64: 1>}, {transform_indices = @transform_1, window_bounds = array<i64: 392, 128>}, {transform_indices = @transform_2, window_bounds = array<i64: 392, 128>}]} {
    %c0 = arith.constant 0 : index
    %c0_0 = arith.constant 0 : index
    %0 = vector.load %arg2[%c0, %c0_0] : memref<392x128xf32, #tpu.memory_space<vmem>>, vector<392x128xf32>
    %cst = arith.constant 0.000000e+00 : f32
    %1 = vector.broadcast %cst : f32 to vector<392x128xf32>
    %2 = arith.maximumf %0, %1 : vector<392x128xf32>
    %3 = tpu.iota {dimensions = array<i32: 0>} : vector<392x128xi32>
    %4 = tpu.iota {dimensions = array<i32: 1>} : vector<392x128xi32>
    %c392_i32 = arith.constant 392 : i32
    %5 = arith.muli %arg0, %c392_i32 : i32
    %6 = vector.broadcast %5 : i32 to vector<392x128xi32>
    %7 = arith.addi %6, %3 : vector<392x128xi32>
    %c128_i32 = arith.constant 128 : i32
    %8 = vector.broadcast %c128_i32 : i32 to vector<392x128xi32>
    %9 = arith.muli %7, %8 : vector<392x128xi32>
    %10 = arith.addi %9, %4 : vector<392x128xi32>
    %c0_1 = arith.constant 0 : index
    %11 = memref.load %arg1[%c0_1] : memref<1xi32, #tpu.memory_space<smem>>
    %c-1640531527_i32 = arith.constant -1640531527 : i32
    %12 = arith.muli %11, %c-1640531527_i32 : i32
    %13 = vector.broadcast %12 : i32 to vector<392x128xi32>
    %14 = arith.addi %10, %13 : vector<392x128xi32>
    %c16_i32 = arith.constant 16 : i32
    %15 = vector.broadcast %c16_i32 : i32 to vector<392x128xi32>
    %16 = arith.shrui %14, %15 : vector<392x128xi32>
    %17 = arith.xori %14, %16 : vector<392x128xi32>
    %c2146121005_i32 = arith.constant 2146121005 : i32
    %18 = vector.broadcast %c2146121005_i32 : i32 to vector<392x128xi32>
    %19 = arith.muli %17, %18 : vector<392x128xi32>
    %c15_i32 = arith.constant 15 : i32
    %20 = vector.broadcast %c15_i32 : i32 to vector<392x128xi32>
    %21 = arith.shrui %19, %20 : vector<392x128xi32>
    %22 = arith.xori %19, %21 : vector<392x128xi32>
    %c-2073254261_i32 = arith.constant -2073254261 : i32
    %23 = vector.broadcast %c-2073254261_i32 : i32 to vector<392x128xi32>
    %24 = arith.muli %22, %23 : vector<392x128xi32>
    %c16_i32_2 = arith.constant 16 : i32
    %25 = vector.broadcast %c16_i32_2 : i32 to vector<392x128xi32>
    %26 = arith.shrui %24, %25 : vector<392x128xi32>
    %27 = arith.xori %24, %26 : vector<392x128xi32>
    %c-429496730_i32 = arith.constant -429496730 : i32
    %28 = vector.broadcast %c-429496730_i32 : i32 to vector<392x128xi32>
    %29 = arith.cmpi ult, %27, %28 : vector<392x128xi32>
    %cst_3 = arith.constant 1.11111116 : f32
    %30 = vector.broadcast %cst_3 : f32 to vector<392x128xf32>
    %31 = arith.mulf %2, %30 : vector<392x128xf32>
    %cst_4 = arith.constant 0.000000e+00 : f32
    %32 = vector.broadcast %cst_4 : f32 to vector<392x128xf32>
    %33 = arith.select %29, %31, %32 : vector<392x128xi1>, vector<392x128xf32>
    %c0_5 = arith.constant 0 : index
    %c0_6 = arith.constant 0 : index
    %34 = vector.load %arg3[%c0_5, %c0_6] : memref<392x128xf32, #tpu.memory_space<vmem>>, vector<392x128xf32>
    tpu.vector_store %arg3[%c0_5, %c0_6], %33 {strides = array<i32>} : memref<392x128xf32, #tpu.memory_space<vmem>>, vector<392x128xf32>,
    return
  }
  func.func @transform_0(%arg0: i32) -> i32 {
    %c0_i32 = arith.constant 0 : i32
    %c0_i32_0 = arith.constant 0 : i32
    return %c0_i32 : i32
  }
  func.func @transform_1(%arg0: i32) -> (i32, i32) {
    %c0_i32 = arith.constant 0 : i32
    %c0_i32_0 = arith.constant 0 : i32
    return %arg0, %c0_i32 : i32, i32
  }
  func.func @transform_2(%arg0: i32) -> (i32, i32) {
    %c0_i32 = arith.constant 0 : i32
    %c0_i32_0 = arith.constant 0 : i32
    return %arg0, %c0_i32 : i32, i32
  }
}

</mosaic_0001>

<bundles_post_ra>
// kernel: relu_dropout.1
= control target key start
LH: loop header
LB: loop body
LE: loop exit
PB: predicated region body
PF: predicated region fallthrough
CT: control target
= control target key end

     0   :  { %s1186_s11 = smov 0   ;;  %s1691_s0 = inlined_call_operand.<no memory space> [shape: s32[1], index: 0, kind: input, shape index: {}]   ;;  %s1692_s1 = inlined_call_operand.vmem [shape: f32[1568,128], index: 1, kind: input, shape index: {}, may-alias: {1,2}]   ;;  %s1693_s2 = inlined_call_operand.vmem [shape: f32[1568,128], index: 2, kind: output, shape index: {}, may-alias: {1,2}]  }
   0x1   :  { %7 = sst [smem:[#allocation2]] %s1691_s0 }
   0x2 LB: > { %s1143_s12 = sadd.s32 4294967295, %s1166_s11   ;;  %p1147_p0 = scmp.ge.s32.totalorder %s1166_s11, 1  ;;  %s1166_s11 = sphi %s1186_s11, %s13_s11  }
   0x3   : > { %p114_p1 = scmp.lt.s32.totalorder %s1166_s11, 5 }
   0x5   : > { %p115_p2 = pnand %p1147_p0, %p114_p1 }
   0x7   : > { %118 = sbr.rel (%p115_p2) target bundleno = 242 (0xf2), region = 28 }
   0xe   : > { %s136_s13 = smul.u32 49, %s1143_s12  ;;  %v246_v0 = vlaneseq  ;;  %s447_s14 = sld [smem:[#allocation2]] }
   0xf   : > { %s298_s15 = smul.u32 392, %s1143_s12 }
  0x10   : > { %p137_p3 = scmp.lt.s32.totalorder %s136_s13, 195  ;;  %v1194_v1 = vshrl.u32 %v246_v0, 7  ;;  %v1196_v2 = vand.u32 127, %v246_v0 }
  0x11   : > { %v1198_v3 = vstv %s298_s15 }
  0x12   : > { %s1715_s13 = smov (!%p137_p3, %s136_s13), 195  ;;  %v300_v4 = vadd.s32 %v1198_v3, %v1194_v1  ;;  %v248_v5 = vadd.s32 8, %v1194_v1  ;;  %v249_v6 = vadd.s32 16, %v1194_v1  ;;  %v250_v7 = vadd.s32 24, %v1194_v1 }
  0x13   : > { %s1148_s0 = sshll.u32 %s1715_s13, 3  ;;  %v251_v11 = vadd.s32 32, %v1194_v1  ;;  %v252_v23 = vadd.s32 40, %v1194_v1  ;;  %v253_v31 = vadd.s32 48, %v1194_v1  ;;  %v254_v32 = vadd.s32 56, %v1194_v1 }
  0x14   : > { %v349_v8 = vmul.u32 128, %v300_v4  ;;  %s448_s16 = smul.u32 2654435769, %s447_s14  ;;  %v301_v9 = vadd.s32 %v1198_v3, %v248_v5  ;;  %v302_v10 = vadd.s32 %v1198_v3, %v249_v6  ;;  %s1216_s19 = scalar_lea.vmem %s1692_s1, %s1148_s0  ;;  %v303_v12 = vadd.s32 %v1198_v3, %v250_v7 }
  0x15   : > { %v148_v17 = vld [vmem:[%s1216_s19] sm:$0xff]  ;;  %v304_v21 = vadd.s32 %v1198_v3, %v251_v11  ;;  %v149_v24 = vld [vmem:[%s1216_s19 + $0x8] sm:$0xff]  ;;  %v150_v25 = vld [vmem:[%s1216_s19 + $0x10] sm:$0xff]  ;;  %v305_v41 = vadd.s32 %v1198_v3, %v252_v23  ;;  %v306_v48 = vadd.s32 %v1198_v3, %v253_v31  ;;  %v1241_v49 = vadd.s32 %v1198_v3, %v254_v32  ;;  %s1280_s22 = scalar_lea.vmem %s1693_s2, %s1148_s0 }
  0x16   : > { %v398_v13 = vadd.s32 %v349_v8, %v1196_v2  ;;  %v1220_v14 = vstv %s448_s16  ;;  %v350_v15 = vmul.u32 128, %v301_v9  ;;  %v351_v16 = vmul.u32 128, %v302_v10  ;;  %v151_v33 = vld [vmem:[%s1216_s19 + $0x18] sm:$0xff]  ;;  %v1244_v50 = vld [vmem:[%s1216_s19 + $0x20] sm:$0xff]  ;;  %v1256_v6 = vld [vmem:[%s1216_s19 + $0x28] sm:$0xff] }
  0x17   : > { %v352_v22 = vmul.u32 128, %v303_v12  ;;  %v197_v29 = vmax.f32 %v148_v17, 0.0  ;;  %v353_v37 = vmul.u32 128, %v304_v21  ;;  %v198_v38 = vmax.f32 %v149_v24, 0.0  ;;  %v1292_v31 = vld [vmem:[%s1216_s19 + $0x48] sm:$0xff]  ;;  %v1295_v32 = vld [vmem:[%s1216_s19 + $0x50] sm:$0xff] }
  0x18   : > { %v450_v18 = vadd.s32 %v1220_v14, %v398_v13  ;;  %v399_v19 = vadd.s32 %v350_v15, %v1196_v2  ;;  %v400_v20 = vadd.s32 %v351_v16, %v1196_v2  ;;  %v199_v39 = vmax.f32 %v150_v25, 0.0  ;;  %v1401_v4 = vld [vmem:[%s1216_s19 + $0x168] sm:$0xff] }
  0x19   : > { %v401_v30 = vadd.s32 %v352_v22, %v1196_v2  ;;  %v402_v45 = vadd.s32 %v353_v37, %v1196_v2  ;;  %v200_v46 = vmax.f32 %v151_v33, 0.0  ;;  %v1246_v52 = vmul.f32 1.1111112, %v197_v29  ;;  %v1286_v29 = vld [vmem:[%s1216_s19 + $0x38] sm:$0xff]  ;;  %v1398_v22 = vld [vmem:[%s1216_s19 + $0x160] sm:$0xff]  ;;  %1702 = vst [vmem:[#allocation11_spill] sm:$0xff] %v1401_v4 }
  0x1a   : > { %v499_v26 = vshrl.u32 %v450_v18, 16  ;;  %v451_v27 = vadd.s32 %v1220_v14, %v399_v19  ;;  %v452_v28 = vadd.s32 %v1220_v14, %v400_v20  ;;  %v1249_v55 = vmul.f32 1.1111112, %v198_v38  ;;  %v1298_v33 = vld [vmem:[%s1216_s19 + $0x58] sm:$0xff]  ;;  %v1313_v38 = vld [vmem:[%s1216_s19 + $0x80] sm:$0xff] }
  0x1b   : > { %v453_v40 = vadd.s32 %v1220_v14, %v401_v30  ;;  %v454_v54 = vadd.s32 %v1220_v14, %v402_v45  ;;  %v354_v58 = vmul.u32 128, %v305_v41  ;;  %v1251_v61 = vmul.f32 1.1111112, %v199_v39  ;;  %v1289_v30 = vld [vmem:[%s1216_s19 + $0x40] sm:$0xff]  ;;  %v1310_v37 = vld [vmem:[%s1216_s19 + $0x78] sm:$0xff]  ;;  %v1316_v39 = vld [vmem:[%s1216_s19 + $0x88] sm:$0xff] }
  0x1c   : > { %v548_v34 = vxor.u32 %v499_v26, %v450_v18  ;;  %v500_v35 = vshrl.u32 %v451_v27, 16  ;;  %v501_v36 = vshrl.u32 %v452_v28, 16  ;;  %v355_v10 = vmul.u32 128, %v306_v48  ;;  %v1322_v41 = vld [vmem:[%s1216_s19 + $0x98] sm:$0xff]  ;;  %v1343_v48 = vld [vmem:[%s1216_s19 + $0xd0] sm:$0xff] }
  0x1d   : > { %v502_v47 = vshrl.u32 %v453_v40, 16  ;;  %v503_v62 = vshrl.u32 %v454_v54, 16  ;;  %v403_v5 = vadd.s32 %v354_v58, %v1196_v2  ;;  %v1264_v13 = vmul.f32 1.1111112, %v200_v46  ;;  %v1334_v45 = vld [vmem:[%s1216_s19 + $0xb8] sm:$0xff]  ;;  %v1337_v46 = vld [vmem:[%s1216_s19 + $0xc0] sm:$0xff] }
  0x1e   : > { %v597_v42 = vmul.u32 2146121005, %v548_v34  ;;  %v549_v43 = vxor.u32 %v500_v35, %v451_v27  ;;  %v550_v44 = vxor.u32 %v501_v36, %v452_v28  ;;  %v404_v19 = vadd.s32 %v355_v10, %v1196_v2  ;;  %v1283_v28 = vld [vmem:[%s1216_s19 + $0x30] sm:$0xff]  ;;  %v1301_v34 = vld [vmem:[%s1216_s19 + $0x60] sm:$0xff]  ;;  %v1304_v35 = vld [vmem:[%s1216_s19 + $0x68] sm:$0xff] }
  0x1f   : > { %v551_v57 = vxor.u32 %v502_v47, %v453_v40  ;;  %v1260_v9 = vxor.u32 %v503_v62, %v454_v54  ;;  %v455_v15 = vadd.s32 %v1220_v14, %v403_v5  ;;  %v1307_v36 = vld [vmem:[%s1216_s19 + $0x70] sm:$0xff]  ;;  %v1340_v47 = vld [vmem:[%s1216_s19 + $0xc8] sm:$0xff]  ;;  %v1361_v58 = vld [vmem:[%s1216_s19 + $0x100] sm:$0xff] }
  0x20   : > { %v646_v51 = vshrl.u32 %v597_v42, 15  ;;  %v598_v53 = vmul.u32 2146121005, %v549_v43  ;;  %v599_v56 = vmul.u32 2146121005, %v550_v44  ;;  %v456_v27 = vadd.s32 %v1220_v14, %v404_v19  ;;  %v1319_v40 = vld [vmem:[%s1216_s19 + $0x90] sm:$0xff] }
  0x21   : > { %v600_v0 = vmul.u32 2146121005, %v551_v57  ;;  %v601_v18 = vmul.u32 2146121005, %v1260_v9  ;;  %v504_v23 = vshrl.u32 %v455_v15, 16  ;;  %v1328_v43 = vld [vmem:[%s1216_s19 + $0xa8] sm:$0xff] }
  0x22   : > { %v695_v59 = vxor.u32 %v646_v51, %v597_v42  ;;  %v647_v60 = vshrl.u32 %v598_v53, 15  ;;  %v648_v63 = vshrl.u32 %v599_v56, 15  ;;  %v1325_v42 = vld [vmem:[%s1216_s19 + $0xa0] sm:$0xff]  ;;  %v1331_v44 = vld [vmem:[%s1216_s19 + $0xb0] sm:$0xff]  ;;  %v1346_v51 = vld [vmem:[%s1216_s19 + $0xd8] sm:$0xff] }
  0x23   : > { %v649_v12 = vshrl.u32 %v600_v0, 15  ;;  %v650_v26 = vshrl.u32 %v601_v18, 15  ;;  %v1352_v54 = vld [vmem:[%s1216_s19 + $0xe8] sm:$0xff]  ;;  %v1358_v57 = vld [vmem:[%s1216_s19 + $0xf8] sm:$0xff]  ;;  %v1379_v5 = vld [vmem:[%s1216_s19 + $0x130] sm:$0xff]  ;;  %v553_v19 = vxor.u32 %v504_v23, %v455_v15 }
  0x24   : > { %v744_v7 = vmul.u32 2221713035, %v695_v59  ;;  %v1258_v8 = vxor.u32 %v647_v60, %v598_v53  ;;  %v1262_v11 = vxor.u32 %v648_v63, %v599_v56  ;;  %v1349_v53 = vld [vmem:[%s1216_s19 + $0xe0] sm:$0xff]  ;;  %v1355_v56 = vld [vmem:[%s1216_s19 + $0xf0] sm:$0xff]  ;;  %v1364_v59 = vld [vmem:[%s1216_s19 + $0x108] sm:$0xff]  ;;  %1696 = vst [vmem:[#allocation5_spill] sm:$0xff] %v1379_v5 }
  0x25   : > { %v1271_v21 = vxor.u32 %v649_v12, %v600_v0  ;;  %v1367_v60 = vld [vmem:[%s1216_s19 + $0x110] sm:$0xff]  ;;  %v1370_v62 = vld [vmem:[%s1216_s19 + $0x118] sm:$0xff]  ;;  %v1373_v63 = vld [vmem:[%s1216_s19 + $0x120] sm:$0xff]  ;;  %v602_v15 = vmul.u32 2146121005, %v553_v19  ;;  %v255_v19 = vadd.s32 64, %v1194_v1 }
  0x26   : > { %v793_v16 = vshrl.u32 %v744_v7, 16  ;;  %v745_v17 = vmul.u32 2221713035, %v1258_v8  ;;  %v746_v20 = vmul.u32 2221713035, %v1262_v11  ;;  %1694 = vst [vmem:[#allocation3_spill] sm:$0xff] %v1373_v63 }
  0x27   : > { %v1376_v0 = vld [vmem:[%s1216_s19 + $0x128] sm:$0xff]  ;;  %v1385_v8 = vld [vmem:[%s1216_s19 + $0x140] sm:$0xff]  ;;  %v1391_v10 = vld [vmem:[%s1216_s19 + $0x150] sm:$0xff] }
  0x28   : > { %v842_v24 = vxor.u32 %v793_v16, %v744_v7  ;;  %v794_v25 = vshrl.u32 %v745_v17, 16  ;;  %1695 = vst [vmem:[#allocation4_spill] sm:$0xff] %v1376_v0  ;;  %v1382_v7 = vld [vmem:[%s1216_s19 + $0x138] sm:$0xff]  ;;  %1698 = vst [vmem:[#allocation7_spill] sm:$0xff] %v1385_v8  ;;  %v1388_v9 = vld [vmem:[%s1216_s19 + $0x148] sm:$0xff]  ;;  %v795_v12 = vshrl.u32 %v746_v20, 16  ;;  %v699_v8 = vxor.u32 %v650_v26, %v601_v18 }
  0x29   : > { %1697 = vst [vmem:[#allocation6_spill] sm:$0xff] %v1382_v7  ;;  %1699 = vst [vmem:[#allocation8_spill] sm:$0xff] %v1388_v9  ;;  %v1394_v11 = vld [vmem:[%s1216_s19 + $0x158] sm:$0xff]  ;;  %v747_v16 = vmul.u32 2221713035, %v1271_v21  ;;  %v1404_v5 = vld [vmem:[%s1216_s19 + $0x170] sm:$0xff] }
  0x2a   : > { %1700 = vst [vmem:[#allocation9_spill] sm:$0xff] %v1391_v10  ;;  %1701 = vst [vmem:[#allocation10_spill] sm:$0xff] %v1394_v11  ;;  %vm891_vm0 = vcmp.lt.u32.totalorder %v842_v24, 3865470566  ;;  %v843_v7 = vxor.u32 %v794_v25, %v745_v17  ;;  %v505_v0 = vshrl.u32 %v456_v27, 16  ;;  %v1407_v9 = vld [vmem:[%s1216_s19 + $0x178] sm:$0xff]  ;;  %v844_v63 = vxor.u32 %v795_v12, %v746_v20 }
  0x2b   : > { %v1410_v10 = vld [vmem:[%s1216_s19 + $0x180] sm:$0xff]  ;;  %v989_v11 = vsel %vm891_vm0, %v1246_v52, 0.0  ;;  %v796_v21 = vshrl.u32 %v747_v16, 16  ;;  %v748_v23 = vmul.u32 2221713035, %v699_v8  ;;  %v356_v24 = vmul.u32 128, %v1241_v49 }
  0x2c   : > { %1038 = vst [vmem:[%s1280_s22] sm:$0xff] %v989_v11  ;;  %vm892_vm1 = vcmp.lt.u32.totalorder %v843_v7, 3865470566  ;;  %v554_v4 = vxor.u32 %v505_v0, %v456_v27  ;;  %vm893_vm2 = vcmp.lt.u32.totalorder %v844_v63, 3865470566  ;;  %v651_v25 = vshrl.u32 %v602_v15, 15 }
  0x2d   : > { %v990_v17 = vsel %vm892_vm1, %v1249_v55, 0.0  ;;  %v845_v18 = vxor.u32 %v796_v21, %v747_v16  ;;  %v991_v26 = vsel %vm893_vm2, %v1251_v61, 0.0  ;;  %v797_v52 = vshrl.u32 %v748_v23, 16 }
  0x2e   : > { %1039 = vst [vmem:[%s1280_s22 + $0x8] sm:$0xff] %v990_v17  ;;  %v603_v20 = vmul.u32 2146121005, %v554_v4  ;;  %v405_v12 = vadd.s32 %v356_v24, %v1196_v2  ;;  %1040 = vst [vmem:[%s1280_s22 + $0x10] sm:$0xff] %v991_v26  ;;  %v1703_v7 = vmax.f32 %v1244_v50, 0.0  ;;  %v700_v0 = vxor.u32 %v651_v25, %v602_v15 }
  0x2f   : > { %vm894_vm3 = vcmp.lt.u32.totalorder %v845_v18, 3865470566  ;;  %v203_v49 = vmax.f32 %v1283_v28, 0.0  ;;  %v846_v63 = vxor.u32 %v797_v52, %v748_v23  ;;  %v1704_v4 = vmax.f32 %v1256_v6, 0.0 }
  0x30   : > { %v944_v27 = vmul.f32 1.1111112, %v1703_v7  ;;  %v992_v55 = vsel %vm894_vm3, %v1264_v13, 0.0  ;;  %v652_v8 = vshrl.u32 %v603_v20, 15  ;;  %v457_v11 = vadd.s32 %v1220_v14, %v405_v12 }
  0x31   : > { %1041 = vst [vmem:[%s1280_s22 + $0x18] sm:$0xff] %v992_v55  ;;  %v749_v61 = vmul.u32 2221713035, %v700_v0  ;;  %v945_v16 = vmul.f32 1.1111112, %v1704_v4  ;;  %v256_v15 = vadd.s32 72, %v1194_v1  ;;  %v308_v23 = vadd.s32 %v1198_v3, %v255_v19 }
  0x32   : > { %vm895_vm4 = vcmp.lt.u32.totalorder %v846_v63, 3865470566  ;;  %v701_v50 = vxor.u32 %v652_v8, %v603_v20  ;;  %v506_v21 = vshrl.u32 %v457_v11, 16  ;;  %v946_v13 = vmul.f32 1.1111112, %v203_v49 }
  0x33   : > { %v993_v28 = vsel %vm895_vm4, %v944_v27, 0.0  ;;  %v798_v24 = vshrl.u32 %v749_v61, 16  ;;  %v204_v18 = vmax.f32 %v1286_v29, 0.0  ;;  %v309_v6 = vadd.s32 %v1198_v3, %v256_v15 }
  0x34   : > { %1042 = vst [vmem:[%s1280_s22 + $0x20] sm:$0xff] %v993_v28  ;;  %v750_v17 = vmul.u32 2221713035, %v701_v50  ;;  %v555_v25 = vxor.u32 %v506_v21, %v457_v11  ;;  %v205_v52 = vmax.f32 %v1289_v30, 0.0  ;;  %v357_v20 = vmul.u32 128, %v308_v23 }
  0x35   : > { %v847_v26 = vxor.u32 %v798_v24, %v749_v61  ;;  %v257_v12 = vadd.s32 80, %v1194_v1  ;;  %v206_v0 = vmax.f32 %v1292_v31, 0.0  ;;  %v358_v49 = vmul.u32 128, %v309_v6 }
  0x36   : > { %v799_v7 = vshrl.u32 %v750_v17, 16  ;;  %v604_v27 = vmul.u32 2146121005, %v555_v25  ;;  %v406_v55 = vadd.s32 %v357_v20, %v1196_v2  ;;  %v258_v63 = vadd.s32 88, %v1194_v1 }
  0x37   : > { %vm896_vm5 = vcmp.lt.u32.totalorder %v847_v26, 3865470566  ;;  %v310_v29 = vadd.s32 %v1198_v3, %v257_v12  ;;  %v407_v30 = vadd.s32 %v358_v49, %v1196_v2  ;;  %v947_v4 = vmul.f32 1.1111112, %v204_v18 }
  0x38   : > { %v994_v8 = vsel %vm896_vm5, %v945_v16, 0.0  ;;  %v848_v11 = vxor.u32 %v799_v7, %v750_v17  ;;  %v653_v61 = vshrl.u32 %v604_v27, 15  ;;  %v458_v19 = vadd.s32 %v1220_v14, %v406_v55 }
  0x39   : > { %1043 = vst [vmem:[%s1280_s22 + $0x28] sm:$0xff] %v994_v8  ;;  %v359_v50 = vmul.u32 128, %v310_v29  ;;  %v311_v31 = vadd.s32 %v1198_v3, %v258_v63  ;;  %v1444_v15 = vmul.f32 1.1111112, %v205_v52  ;;  %v459_v28 = vadd.s32 %v1220_v14, %v407_v30 }
  0x3a   : > { %vm897_vm6 = vcmp.lt.u32.totalorder %v848_v11, 3865470566  ;;  %v702_v21 = vxor.u32 %v653_v61, %v604_v27  ;;  %v507_v16 = vshrl.u32 %v458_v19, 16  ;;  %v1449_v18 = vmul.f32 1.1111112, %v206_v0 }
  0x3b   : > { %v995_v24 = vsel %vm897_vm6, %v946_v13, 0.0  ;;  %v408_v23 = vadd.s32 %v359_v50, %v1196_v2  ;;  %v360_v17 = vmul.u32 128, %v311_v31  ;;  %v508_v6 = vshrl.u32 %v459_v28, 16 }
  0x3c   : > { %1044 = vst [vmem:[%s1280_s22 + $0x30] sm:$0xff] %v995_v24  ;;  %v751_v25 = vmul.u32 2221713035, %v702_v21  ;;  %v259_v26 = vadd.s32 96, %v1194_v1  ;;  %v556_v20 = vxor.u32 %v507_v16, %v458_v19  ;;  %v207_v12 = vmax.f32 %v1295_v32, 0.0 }
  0x3d   : > { %v460_v52 = vadd.s32 %v1220_v14, %v408_v23  ;;  %v409_v7 = vadd.s32 %v360_v17, %v1196_v2  ;;  %v557_v13 = vxor.u32 %v508_v6, %v459_v28  ;;  %v260_v55 = vadd.s32 104, %v1194_v1 }
  0x3e   : > { %v800_v27 = vshrl.u32 %v751_v25, 16  ;;  %v312_v49 = vadd.s32 %v1198_v3, %v259_v26  ;;  %v605_v29 = vmul.u32 2146121005, %v556_v20  ;;  %v208_v0 = vmax.f32 %v1298_v33, 0.0 }
  0x3f   : > { %v509_v63 = vshrl.u32 %v460_v52, 16  ;;  %v461_v8 = vadd.s32 %v1220_v14, %v409_v7  ;;  %v606_v61 = vmul.u32 2146121005, %v557_v13  ;;  %v313_v30 = vadd.s32 %v1198_v3, %v260_v55 }
  0x40   : > { %v849_v11 = vxor.u32 %v800_v27, %v751_v25  ;;  %v361_v32 = vmul.u32 128, %v312_v49  ;;  %v654_v19 = vshrl.u32 %v605_v29, 15  ;;  %v950_v31 = vmul.f32 1.1111112, %v207_v12 }
  0x41   : > { %v558_v50 = vxor.u32 %v509_v63, %v460_v52  ;;  %v510_v21 = vshrl.u32 %v461_v8, 16  ;;  %v655_v28 = vshrl.u32 %v606_v61, 15  ;;  %v362_v16 = vmul.u32 128, %v313_v30 }
  0x42   : > { %vm898_vm7 = vcmp.lt.u32.totalorder %v849_v11, 3865470566  ;;  %v410_v24 = vadd.s32 %v361_v32, %v1196_v2  ;;  %v703_v17 = vxor.u32 %v654_v19, %v605_v29  ;;  %v261_v7 = vadd.s32 112, %v1194_v1 }
  0x43   : > { %v996_v23 = vsel %vm898_vm7, %v947_v4, 0.0  ;;  %v607_v33 = vmul.u32 2146121005, %v558_v50  ;;  %v559_v6 = vxor.u32 %v510_v21, %v461_v8  ;;  %v704_v25 = vxor.u32 %v655_v28, %v606_v61 }
  0x44   : > { %1045 = vst [vmem:[%s1280_s22 + $0x38] sm:$0xff] %v996_v23  ;;  %v462_v26 = vadd.s32 %v1220_v14, %v410_v24  ;;  %v411_v20 = vadd.s32 %v362_v16, %v1196_v2  ;;  %v752_v52 = vmul.u32 2221713035, %v703_v17  ;;  %v209_v13 = vmax.f32 %v1301_v34, 0.0 }
  0x45   : > { %v656_v12 = vshrl.u32 %v607_v33, 15  ;;  %v608_v27 = vmul.u32 2146121005, %v559_v6  ;;  %v753_v49 = vmul.u32 2221713035, %v704_v25  ;;  %v314_v29 = vadd.s32 %v1198_v3, %v261_v7 }
  0x46   : > { %v511_v55 = vshrl.u32 %v462_v26, 16  ;;  %v463_v4 = vadd.s32 %v1220_v14, %v411_v20  ;;  %v801_v63 = vshrl.u32 %v752_v52, 16  ;;  %v210_v61 = vmax.f32 %v1304_v35, 0.0 }
  0x47   : > { %v705_v8 = vxor.u32 %v656_v12, %v607_v33  ;;  %v657_v11 = vshrl.u32 %v608_v27, 15  ;;  %v802_v32 = vshrl.u32 %v753_v49, 16  ;;  %v363_v50 = vmul.u32 128, %v314_v29 }
  0x48   : > { %v560_v30 = vxor.u32 %v511_v55, %v462_v26  ;;  %v512_v19 = vshrl.u32 %v463_v4, 16  ;;  %v850_v21 = vxor.u32 %v801_v63, %v752_v52  ;;  %v262_v34 = vadd.s32 120, %v1194_v1 }
  0x49   : > { %v754_v28 = vmul.u32 2221713035, %v705_v8  ;;  %v706_v24 = vxor.u32 %v657_v11, %v608_v27  ;;  %v851_v16 = vxor.u32 %v802_v32, %v753_v49  ;;  %v412_v6 = vadd.s32 %v363_v50, %v1196_v2 }
  0x4a   : > { %v609_v23 = vmul.u32 2146121005, %v560_v30  ;;  %v561_v17 = vxor.u32 %v512_v19, %v463_v4  ;;  %vm899_vm8 = vcmp.lt.u32.totalorder %v850_v21, 3865470566  ;;  %v315_v35 = vadd.s32 %v1198_v3, %v262_v34 }
  0x4b   : > { %v803_v33 = vshrl.u32 %v754_v28, 16  ;;  %v755_v25 = vmul.u32 2221713035, %v706_v24  ;;  %v997_v26 = vsel %vm899_vm8, %v1444_v15, 0.0  ;;  %vm900_vm9 = vcmp.lt.u32.totalorder %v851_v16, 3865470566 }
  0x4c   : > { %v658_v20 = vshrl.u32 %v609_v23, 15  ;;  %v610_v7 = vmul.u32 2146121005, %v561_v17  ;;  %1046 = vst [vmem:[%s1280_s22 + $0x40] sm:$0xff] %v997_v26  ;;  %v998_v52 = vsel %vm900_vm9, %v1449_v18, 0.0  ;;  %v464_v49 = vadd.s32 %v1220_v14, %v412_v6 }
  0x4d   : > { %v852_v12 = vxor.u32 %v803_v33, %v754_v28  ;;  %v804_v27 = vshrl.u32 %v755_v25, 16  ;;  %1047 = vst [vmem:[%s1280_s22 + $0x48] sm:$0xff] %v998_v52  ;;  %v951_v55 = vmul.f32 1.1111112, %v208_v0  ;;  %v364_v63 = vmul.u32 128, %v315_v35 }
  0x4e   : > { %v707_v4 = vxor.u32 %v658_v20, %v609_v23  ;;  %v659_v29 = vshrl.u32 %v610_v7, 15  ;;  %v952_v15 = vmul.f32 1.1111112, %v209_v13  ;;  %v513_v11 = vshrl.u32 %v464_v49, 16 }
  0x4f   : > { %vm901_vm10 = vcmp.lt.u32.totalorder %v852_v12, 3865470566  ;;  %v853_v8 = vxor.u32 %v804_v27, %v755_v25  ;;  %v413_v18 = vadd.s32 %v364_v63, %v1196_v2  ;;  %v953_v50 = vmul.f32 1.1111112, %v210_v61 }
  0x50   : > { %v999_v32 = vsel %vm901_vm10, %v950_v31, 0.0  ;;  %v756_v30 = vmul.u32 2221713035, %v707_v4  ;;  %v708_v19 = vxor.u32 %v659_v29, %v610_v7  ;;  %v562_v21 = vxor.u32 %v513_v11, %v464_v49 }
  0x51   : > { %1048 = vst [vmem:[%s1280_s22 + $0x50] sm:$0xff] %v999_v32  ;;  %vm902_vm11 = vcmp.lt.u32.totalorder %v853_v8, 3865470566  ;;  %v263_v28 = vadd.s32 128, %v1194_v1  ;;  %v465_v16 = vadd.s32 %v1220_v14, %v413_v18  ;;  %v211_v13 = vmax.f32 %v1307_v36, 0.0 }
  0x52   : > { %v1000_v0 = vsel %vm902_vm11, %v951_v55, 0.0  ;;  %v805_v24 = vshrl.u32 %v756_v30, 16  ;;  %v757_v34 = vmul.u32 2221713035, %v708_v19  ;;  %v611_v23 = vmul.u32 2146121005, %v562_v21 }
  0x53   : > { %1049 = vst [vmem:[%s1280_s22 + $0x58] sm:$0xff] %v1000_v0  ;;  %v316_v31 = vadd.s32 %v1198_v3, %v263_v28  ;;  %v264_v17 = vadd.s32 136, %v1194_v1  ;;  %v212_v61 = vmax.f32 %v1310_v37, 0.0  ;;  %v514_v25 = vshrl.u32 %v465_v16, 16 }
  0x54   : > { %v854_v6 = vxor.u32 %v805_v24, %v756_v30  ;;  %v806_v33 = vshrl.u32 %v757_v34, 16  ;;  %v660_v35 = vshrl.u32 %v611_v23, 15  ;;  %v213_v26 = vmax.f32 %v1313_v38, 0.0 }
  0x55   : > { %v365_v20 = vmul.u32 128, %v316_v31  ;;  %v317_v7 = vadd.s32 %v1198_v3, %v264_v17  ;;  %v563_v36 = vxor.u32 %v514_v25, %v465_v16  ;;  %v265_v12 = vadd.s32 144, %v1194_v1 }
  0x56   : > { %vm903_vm12 = vcmp.lt.u32.totalorder %v854_v6, 3865470566  ;;  %v855_v52 = vxor.u32 %v806_v33, %v757_v34  ;;  %v709_v49 = vxor.u32 %v660_v35, %v611_v23  ;;  %v954_v37 = vmul.f32 1.1111112, %v211_v13 }
  0x57   : > { %v1001_v27 = vsel %vm903_vm12, %v952_v15, 0.0  ;;  %v414_v55 = vadd.s32 %v365_v20, %v1196_v2  ;;  %v366_v4 = vmul.u32 128, %v317_v7  ;;  %v612_v29 = vmul.u32 2146121005, %v563_v36 }
  0x58   : > { %1050 = vst [vmem:[%s1280_s22 + $0x60] sm:$0xff] %v1001_v27  ;;  %vm904_vm13 = vcmp.lt.u32.totalorder %v855_v52, 3865470566  ;;  %v318_v38 = vadd.s32 %v1198_v3, %v265_v12  ;;  %v758_v8 = vmul.u32 2221713035, %v709_v49  ;;  %v266_v18 = vadd.s32 152, %v1194_v1 }
  0x59   : > { %v1002_v63 = vsel %vm904_vm13, %v953_v50, 0.0  ;;  %v466_v11 = vadd.s32 %v1220_v14, %v414_v55  ;;  %v415_v32 = vadd.s32 %v366_v4, %v1196_v2  ;;  %v661_v30 = vshrl.u32 %v612_v29, 15 }
  0x5a   : > { %1051 = vst [vmem:[%s1280_s22 + $0x68] sm:$0xff] %v1002_v63  ;;  %v955_v19 = vmul.f32 1.1111112, %v212_v61  ;;  %v367_v15 = vmul.u32 128, %v318_v38  ;;  %v807_v21 = vshrl.u32 %v758_v8, 16  ;;  %v214_v50 = vmax.f32 %v1316_v39, 0.0 }
  0x5b   : > { %v515_v28 = vshrl.u32 %v466_v11, 16  ;;  %v1496_v0 = vmul.f32 1.1111112, %v213_v26  ;;  %v467_v24 = vadd.s32 %v1220_v14, %v415_v32  ;;  %v710_v34 = vxor.u32 %v661_v30, %v612_v29 }
  0x5c   : > { %v416_v16 = vadd.s32 %v367_v15, %v1196_v2  ;;  %v319_v13 = vadd.s32 %v1198_v3, %v266_v18  ;;  %v856_v23 = vxor.u32 %v807_v21, %v758_v8  ;;  %v267_v6 = vadd.s32 160, %v1194_v1 }
  0x5d   : > { %v564_v31 = vxor.u32 %v515_v28, %v466_v11  ;;  %v516_v17 = vshrl.u32 %v467_v24, 16  ;;  %v759_v33 = vmul.u32 2221713035, %v710_v34  ;;  %v215_v61 = vmax.f32 %v1319_v40, 0.0 }
  0x5e   : > { %v468_v25 = vadd.s32 %v1220_v14, %v416_v16  ;;  %v368_v35 = vmul.u32 128, %v319_v13  ;;  %vm905_vm14 = vcmp.lt.u32.totalorder %v856_v23, 3865470566  ;;  %v320_v39 = vadd.s32 %v1198_v3, %v267_v6 }
  0x5f   : > { %v613_v26 = vmul.u32 2146121005, %v564_v31  ;;  %v565_v20 = vxor.u32 %v516_v17, %v467_v24  ;;  %v1003_v7 = vsel %vm905_vm14, %v954_v37, 0.0  ;;  %v808_v52 = vshrl.u32 %v759_v33, 16 }
  0x60   : > { %v517_v36 = vshrl.u32 %v468_v25, 16  ;;  %v417_v12 = vadd.s32 %v368_v35, %v1196_v2  ;;  %1052 = vst [vmem:[%s1280_s22 + $0x70] sm:$0xff] %v1003_v7  ;;  %v957_v55 = vmul.f32 1.1111112, %v214_v50  ;;  %v369_v4 = vmul.u32 128, %v320_v39 }
  0x61   : > { %v662_v27 = vshrl.u32 %v613_v26, 15  ;;  %v614_v49 = vmul.u32 2146121005, %v565_v20  ;;  %v857_v29 = vxor.u32 %v808_v52, %v759_v33  ;;  %v268_v63 = vadd.s32 168, %v1194_v1 }
  0x62   : > { %v566_v40 = vxor.u32 %v517_v36, %v468_v25  ;;  %v469_v38 = vadd.s32 %v1220_v14, %v417_v12  ;;  %v958_v32 = vmul.f32 1.1111112, %v215_v61  ;;  %v418_v37 = vadd.s32 %v369_v4, %v1196_v2 }
  0x63   : > { %v711_v8 = vxor.u32 %v662_v27, %v613_v26  ;;  %v663_v11 = vshrl.u32 %v614_v49, 15  ;;  %vm906_vm15 = vcmp.lt.u32.totalorder %v857_v29, 3865470566  ;;  %v321_v18 = vadd.s32 %v1198_v3, %v268_v63 }
  0x64   : > { %v615_v30 = vmul.u32 2146121005, %v566_v40  ;;  %v518_v15 = vshrl.u32 %v469_v38, 16  ;;  %v1004_v21 = vsel %vm906_vm15, %v955_v19, 0.0  ;;  %v470_v34 = vadd.s32 %v1220_v14, %v418_v37 }
  0x65   : > { %v760_v28 = vmul.u32 2221713035, %v711_v8  ;;  %v712_v24 = vxor.u32 %v663_v11, %v614_v49  ;;  %1053 = vst [vmem:[%s1280_s22 + $0x78] sm:$0xff] %v1004_v21  ;;  %v216_v16 = vmax.f32 %v1322_v41, 0.0  ;;  %v370_v23 = vmul.u32 128, %v321_v18 }
  0x66   : > { %v664_v50 = vshrl.u32 %v615_v30, 15  ;;  %v567_v13 = vxor.u32 %v518_v15, %v469_v38  ;;  %v519_v6 = vshrl.u32 %v470_v34, 16  ;;  %v269_v33 = vadd.s32 176, %v1194_v1 }
  0x67   : > { %v809_v31 = vshrl.u32 %v760_v28, 16  ;;  %v761_v17 = vmul.u32 2221713035, %v712_v24  ;;  %v217_v35 = vmax.f32 %v1325_v42, 0.0  ;;  %v419_v19 = vadd.s32 %v370_v23, %v1196_v2 }
  0x68   : > { %v713_v61 = vxor.u32 %v664_v50, %v615_v30  ;;  %v616_v25 = vmul.u32 2146121005, %v567_v13  ;;  %v568_v39 = vxor.u32 %v519_v6, %v470_v34  ;;  %v322_v7 = vadd.s32 %v1198_v3, %v269_v33 }
  0x69   : > { %v858_v26 = vxor.u32 %v809_v31, %v760_v28  ;;  %v810_v20 = vshrl.u32 %v761_v17, 16  ;;  %v959_v36 = vmul.f32 1.1111112, %v216_v16  ;;  %v471_v12 = vadd.s32 %v1220_v14, %v419_v19 }
  0x6a   : > { %v762_v41 = vmul.u32 2221713035, %v713_v61  ;;  %v665_v52 = vshrl.u32 %v616_v25, 15  ;;  %v617_v49 = vmul.u32 2146121005, %v568_v39  ;;  %v270_v11 = vadd.s32 184, %v1194_v1 }
  0x6b   : > { %vm907_vm0 = vcmp.lt.u32.totalorder %v858_v26, 3865470566  ;;  %v859_v27 = vxor.u32 %v810_v20, %v761_v17  ;;  %v371_v4 = vmul.u32 128, %v322_v7  ;;  %v520_v38 = vshrl.u32 %v471_v12, 16 }
  0x6c   : > { %v1005_v42 = vsel %vm907_vm0, %v1496_v0, 0.0  ;;  %v811_v29 = vshrl.u32 %v762_v41, 16  ;;  %v714_v40 = vxor.u32 %v665_v52, %v616_v25  ;;  %v666_v63 = vshrl.u32 %v617_v49, 15 }
  0x6d   : > { %1054 = vst [vmem:[%s1280_s22 + $0x80] sm:$0xff] %v1005_v42  ;;  %vm908_vm1 = vcmp.lt.u32.totalorder %v859_v27, 3865470566  ;;  %v420_v8 = vadd.s32 %v371_v4, %v1196_v2  ;;  %v569_v18 = vxor.u32 %v520_v38, %v471_v12  ;;  %v960_v28 = vmul.f32 1.1111112, %v217_v35 }
  0x6e   : > { %v1006_v37 = vsel %vm908_vm1, %v957_v55, 0.0  ;;  %v860_v30 = vxor.u32 %v811_v29, %v762_v41  ;;  %v763_v15 = vmul.u32 2221713035, %v714_v40  ;;  %v715_v21 = vxor.u32 %v666_v63, %v617_v49 }
  0x6f   : > { %1055 = vst [vmem:[%s1280_s22 + $0x88] sm:$0xff] %v1006_v37  ;;  %v472_v0 = vadd.s32 %v1220_v14, %v420_v8  ;;  %v323_v24 = vadd.s32 %v1198_v3, %v270_v11  ;;  %v618_v50 = vmul.u32 2146121005, %v569_v18  ;;  %v218_v17 = vmax.f32 %v1328_v43, 0.0 }
  0x70   : > { %vm909_vm2 = vcmp.lt.u32.totalorder %v860_v30, 3865470566  ;;  %v812_v34 = vshrl.u32 %v763_v15, 16  ;;  %v764_v13 = vmul.u32 2221713035, %v715_v21  ;;  %v271_v33 = vadd.s32 192, %v1194_v1 }
  0x71   : > { %v1007_v16 = vsel %vm909_vm2, %v958_v32, 0.0  ;;  %v521_v23 = vshrl.u32 %v472_v0, 16  ;;  %v372_v31 = vmul.u32 128, %v323_v24  ;;  %v667_v6 = vshrl.u32 %v618_v50, 15 }
  0x72   : > { %1056 = vst [vmem:[%s1280_s22 + $0x90] sm:$0xff] %v1007_v16  ;;  %v861_v55 = vxor.u32 %v812_v34, %v763_v15  ;;  %v813_v61 = vshrl.u32 %v764_v13, 16  ;;  %v219_v25 = vmax.f32 %v1331_v44, 0.0  ;;  %v324_v32 = vadd.s32 %v1198_v3, %v271_v33 }
  0x73   : > { %v570_v35 = vxor.u32 %v521_v23, %v472_v0  ;;  %v421_v19 = vadd.s32 %v372_v31, %v1196_v2  ;;  %v716_v26 = vxor.u32 %v667_v6, %v618_v50  ;;  %v272_v20 = vadd.s32 200, %v1194_v1 }
  0x74   : > { %vm910_vm3 = vcmp.lt.u32.totalorder %v861_v55, 3865470566  ;;  %v862_v7 = vxor.u32 %v813_v61, %v764_v13  ;;  %v373_v12 = vmul.u32 128, %v324_v32  ;;  %v961_v27 = vmul.f32 1.1111112, %v218_v17 }
  0x75   : > { %v1008_v39 = vsel %vm910_vm3, %v959_v36, 0.0  ;;  %v619_v41 = vmul.u32 2146121005, %v570_v35  ;;  %v473_v43 = vadd.s32 %v1220_v14, %v421_v19  ;;  %v765_v52 = vmul.u32 2221713035, %v716_v26 }
  0x76   : > { %1057 = vst [vmem:[%s1280_s22 + $0x98] sm:$0xff] %v1008_v39  ;;  %v325_v44 = vadd.s32 %v1198_v3, %v272_v20  ;;  %vm911_vm4 = vcmp.lt.u32.totalorder %v862_v7, 3865470566  ;;  %v422_v40 = vadd.s32 %v373_v12, %v1196_v2  ;;  %v962_v63 = vmul.f32 1.1111112, %v219_v25 }
  0x77   : > { %v668_v49 = vshrl.u32 %v619_v41, 15  ;;  %v522_v4 = vshrl.u32 %v473_v43, 16  ;;  %v1009_v42 = vsel %vm911_vm4, %v960_v28, 0.0  ;;  %v814_v29 = vshrl.u32 %v765_v52, 16 }
  0x78   : > { %v374_v38 = vmul.u32 128, %v325_v44  ;;  %1058 = vst [vmem:[%s1280_s22 + $0xa0] sm:$0xff] %v1009_v42  ;;  %v273_v11 = vadd.s32 208, %v1194_v1  ;;  %v220_v30 = vmax.f32 %v1334_v45, 0.0  ;;  %v474_v15 = vadd.s32 %v1220_v14, %v422_v40 }
  0x79   : > { %v717_v36 = vxor.u32 %v668_v49, %v619_v41  ;;  %v571_v8 = vxor.u32 %v522_v4, %v473_v43  ;;  %v863_v37 = vxor.u32 %v814_v29, %v765_v52  ;;  %v274_v24 = vadd.s32 216, %v1194_v1 }
  0x7a   : > { %v423_v18 = vadd.s32 %v374_v38, %v1196_v2  ;;  %v326_v0 = vadd.s32 %v1198_v3, %v273_v11  ;;  %v221_v34 = vmax.f32 %v1337_v46, 0.0  ;;  %v523_v50 = vshrl.u32 %v474_v15, 16 }
  0x7b   : > { %v766_v21 = vmul.u32 2221713035, %v717_v36  ;;  %v620_v28 = vmul.u32 2146121005, %v571_v8  ;;  %vm912_vm5 = vcmp.lt.u32.totalorder %v863_v37, 3865470566  ;;  %v327_v33 = vadd.s32 %v1198_v3, %v274_v24 }
  0x7c   : > { %v475_v16 = vadd.s32 %v1220_v14, %v423_v18  ;;  %v1010_v13 = vsel %vm912_vm5, %v961_v27, 0.0  ;;  %v375_v45 = vmul.u32 128, %v326_v0  ;;  %v963_v55 = vmul.f32 1.1111112, %v220_v30 }
  0x7d   : > { %v815_v23 = vshrl.u32 %v766_v21, 16  ;;  %v669_v31 = vshrl.u32 %v620_v28, 15  ;;  %1059 = vst [vmem:[%s1280_s22 + $0xa8] sm:$0xff] %v1010_v13  ;;  %v572_v17 = vxor.u32 %v523_v50, %v474_v15  ;;  %v275_v46 = vadd.s32 224, %v1194_v1 }
  0x7e   : > { %v524_v6 = vshrl.u32 %v475_v16, 16  ;;  %v424_v35 = vadd.s32 %v375_v45, %v1196_v2  ;;  %v964_v26 = vmul.f32 1.1111112, %v221_v34  ;;  %v376_v20 = vmul.u32 128, %v327_v33 }
  0x7f   : > { %v864_v61 = vxor.u32 %v815_v23, %v766_v21  ;;  %v718_v25 = vxor.u32 %v669_v31, %v620_v28  ;;  %v621_v19 = vmul.u32 2146121005, %v572_v17  ;;  %v328_v41 = vadd.s32 %v1198_v3, %v275_v46 }
  0x80   : > { %v573_v32 = vxor.u32 %v524_v6, %v475_v16  ;;  %v476_v7 = vadd.s32 %v1220_v14, %v424_v35  ;;  %v425_v44 = vadd.s32 %v376_v20, %v1196_v2  ;;  %v222_v49 = vmax.f32 %v1340_v47, 0.0 }
  0x81   : > { %vm913_vm6 = vcmp.lt.u32.totalorder %v864_v61, 3865470566  ;;  %v767_v39 = vmul.u32 2221713035, %v718_v25  ;;  %v670_v52 = vshrl.u32 %v621_v19, 15  ;;  %v377_v42 = vmul.u32 128, %v328_v41 }
  0x82   : > { %v1011_v43 = vsel %vm913_vm6, %v962_v63, 0.0  ;;  %v622_v12 = vmul.u32 2146121005, %v573_v32  ;;  %v525_v4 = vshrl.u32 %v476_v7, 16  ;;  %v477_v38 = vadd.s32 %v1220_v14, %v425_v44 }
  0x83   : > { %1060 = vst [vmem:[%s1280_s22 + $0xb0] sm:$0xff] %v1011_v43  ;;  %v816_v27 = vshrl.u32 %v767_v39, 16  ;;  %v719_v29 = vxor.u32 %v670_v52, %v621_v19  ;;  %v276_v36 = vadd.s32 232, %v1194_v1  ;;  %v223_v63 = vmax.f32 %v1343_v48, 0.0 }
  0x84   : > { %v671_v40 = vshrl.u32 %v622_v12, 15  ;;  %v574_v11 = vxor.u32 %v525_v4, %v476_v7  ;;  %v426_v37 = vadd.s32 %v377_v42, %v1196_v2  ;;  %v526_v18 = vshrl.u32 %v477_v38, 16 }
  0x85   : > { %v865_v8 = vxor.u32 %v816_v27, %v767_v39  ;;  %v768_v30 = vmul.u32 2221713035, %v719_v29  ;;  %v329_v47 = vadd.s32 %v1198_v3, %v276_v36  ;;  %v965_v21 = vmul.f32 1.1111112, %v222_v49 }
  0x86   : > { %v720_v15 = vxor.u32 %v671_v40, %v622_v12  ;;  %v623_v28 = vmul.u32 2146121005, %v574_v11  ;;  %v478_v0 = vadd.s32 %v1220_v14, %v426_v37  ;;  %v575_v16 = vxor.u32 %v526_v18, %v477_v38 }
  0x87   : > { %vm914_vm7 = vcmp.lt.u32.totalorder %v865_v8, 3865470566  ;;  %v817_v34 = vshrl.u32 %v768_v30, 16  ;;  %v378_v23 = vmul.u32 128, %v329_v47  ;;  %v277_v31 = vadd.s32 240, %v1194_v1 }
  0x88   : > { %v1012_v24 = vsel %vm914_vm7, %v963_v55, 0.0  ;;  %v769_v50 = vmul.u32 2221713035, %v720_v15  ;;  %v672_v13 = vshrl.u32 %v623_v28, 15  ;;  %v527_v48 = vshrl.u32 %v478_v0, 16 }
  0x89   : > { %1061 = vst [vmem:[%s1280_s22 + $0xb8] sm:$0xff] %v1012_v24  ;;  %v866_v45 = vxor.u32 %v817_v34, %v768_v30  ;;  %v966_v6 = vmul.f32 1.1111112, %v223_v63  ;;  %v624_v33 = vmul.u32 2146121005, %v575_v16  ;;  %v427_v35 = vadd.s32 %v378_v23, %v1196_v2 }
  0x8a   : > { %v818_v17 = vshrl.u32 %v769_v50, 16  ;;  %v721_v61 = vxor.u32 %v672_v13, %v623_v28  ;;  %v576_v25 = vxor.u32 %v527_v48, %v478_v0  ;;  %v330_v55 = vadd.s32 %v1198_v3, %v277_v31 }
  0x8b   : > { %vm915_vm8 = vcmp.lt.u32.totalorder %v866_v45, 3865470566  ;;  %v224_v19 = vmax.f32 %v1346_v51, 0.0  ;;  %v673_v32 = vshrl.u32 %v624_v33, 15  ;;  %v479_v41 = vadd.s32 %v1220_v14, %v427_v35 }
  0x8c   : > { %v867_v46 = vxor.u32 %v818_v17, %v769_v50  ;;  %v1013_v20 = vsel %vm915_vm8, %v964_v26, 0.0  ;;  %v770_v39 = vmul.u32 2221713035, %v721_v61  ;;  %v625_v7 = vmul.u32 2146121005, %v576_v25 }
  0x8d   : > { %1062 = vst [vmem:[%s1280_s22 + $0xc0] sm:$0xff] %v1013_v20  ;;  %v722_v43 = vxor.u32 %v673_v32, %v624_v33  ;;  %v379_v52 = vmul.u32 128, %v330_v55  ;;  %v278_v12 = vadd.s32 248, %v1194_v1  ;;  %v528_v4 = vshrl.u32 %v479_v41, 16 }
  0x8e   : > { %vm916_vm9 = vcmp.lt.u32.totalorder %v867_v46, 3865470566  ;;  %v819_v27 = vshrl.u32 %v770_v39, 16  ;;  %v674_v49 = vshrl.u32 %v625_v7, 15  ;;  %v967_v29 = vmul.f32 1.1111112, %v224_v19 }
  0x8f   : > { %v1014_v44 = vsel %vm916_vm9, %v965_v21, 0.0  ;;  %v771_v42 = vmul.u32 2221713035, %v722_v43  ;;  %v428_v51 = vadd.s32 %v379_v52, %v1196_v2  ;;  %v331_v26 = vadd.s32 %v1198_v3, %v278_v12 }
  0x90   : > { %1063 = vst [vmem:[%s1280_s22 + $0xc8] sm:$0xff] %v1014_v44  ;;  %v868_v40 = vxor.u32 %v819_v27, %v770_v39  ;;  %v225_v38 = vmax.f32 %v1349_v53, 0.0  ;;  %v723_v36 = vxor.u32 %v674_v49, %v625_v7  ;;  %v577_v8 = vxor.u32 %v528_v4, %v479_v41 }
  0x91   : > { %v820_v63 = vshrl.u32 %v771_v42, 16  ;;  %v480_v11 = vadd.s32 %v1220_v14, %v428_v51  ;;  %v380_v37 = vmul.u32 128, %v331_v26  ;;  %v279_v30 = vadd.s32 256, %v1194_v1 }
  0x92   : > { %vm917_vm10 = vcmp.lt.u32.totalorder %v868_v40, 3865470566  ;;  %v772_v15 = vmul.u32 2221713035, %v723_v36  ;;  %v626_v18 = vmul.u32 2146121005, %v577_v8 }
  0x93   : > { %v1015_v47 = vsel %vm917_vm10, %v966_v6, 0.0  ;;  %v869_v21 = vxor.u32 %v820_v63, %v771_v42  ;;  %v529_v28 = vshrl.u32 %v480_v11, 16  ;;  %v429_v0 = vadd.s32 %v380_v37, %v1196_v2 }
  0x94   : > { %1064 = vst [vmem:[%s1280_s22 + $0xd0] sm:$0xff] %v1015_v47  ;;  %v821_v24 = vshrl.u32 %v772_v15, 16  ;;  %v968_v53 = vmul.f32 1.1111112, %v225_v38  ;;  %v675_v34 = vshrl.u32 %v626_v18, 15  ;;  %v332_v50 = vadd.s32 %v1198_v3, %v279_v30 }
  0x95   : > { %vm918_vm11 = vcmp.lt.u32.totalorder %v869_v21, 3865470566  ;;  %v226_v16 = vmax.f32 %v1352_v54, 0.0  ;;  %v578_v13 = vxor.u32 %v529_v28, %v480_v11  ;;  %v481_v48 = vadd.s32 %v1220_v14, %v429_v0 }
  0x96   : > { %v1016_v23 = vsel %vm918_vm11, %v967_v29, 0.0  ;;  %v870_v31 = vxor.u32 %v821_v24, %v772_v15  ;;  %v724_v45 = vxor.u32 %v675_v34, %v626_v18  ;;  %v381_v17 = vmul.u32 128, %v332_v50 }
  0x97   : > { %1065 = vst [vmem:[%s1280_s22 + $0xd8] sm:$0xff] %v1016_v23  ;;  %v227_v6 = vmax.f32 %v1355_v56, 0.0  ;;  %v627_v33 = vmul.u32 2146121005, %v578_v13  ;;  %v530_v61 = vshrl.u32 %v481_v48, 16  ;;  %v280_v25 = vadd.s32 264, %v1194_v1 }
  0x98   : > { %vm919_vm12 = vcmp.lt.u32.totalorder %v870_v31, 3865470566  ;;  %v773_v35 = vmul.u32 2221713035, %v724_v45  ;;  %v228_v55 = vmax.f32 %v1358_v57, 0.0  ;;  %v430_v54 = vadd.s32 %v381_v17, %v1196_v2 }
  0x99   : > { %v1017_v46 = vsel %vm919_vm12, %v968_v53, 0.0  ;;  %v676_v19 = vshrl.u32 %v627_v33, 15  ;;  %v579_v32 = vxor.u32 %v530_v61, %v481_v48  ;;  %v333_v20 = vadd.s32 %v1198_v3, %v280_v25 }
  0x9a   : > { %1066 = vst [vmem:[%s1280_s22 + $0xe0] sm:$0xff] %v1017_v46  ;;  %v822_v39 = vshrl.u32 %v773_v35, 16  ;;  %v969_v7 = vmul.f32 1.1111112, %v226_v16  ;;  %v482_v56 = vadd.s32 %v1220_v14, %v430_v54  ;;  %v281_v41 = vadd.s32 272, %v1194_v1 }
  0x9b   : > { %v725_v43 = vxor.u32 %v676_v19, %v627_v33  ;;  %v970_v52 = vmul.f32 1.1111112, %v227_v6  ;;  %v628_v12 = vmul.u32 2146121005, %v579_v32  ;;  %v382_v44 = vmul.u32 128, %v333_v20 }
  0x9c   : > { %v871_v27 = vxor.u32 %v822_v39, %v773_v35  ;;  %v531_v57 = vshrl.u32 %v482_v56, 16  ;;  %v334_v49 = vadd.s32 %v1198_v3, %v281_v41  ;;  %v282_v4 = vadd.s32 280, %v1194_v1 }
  0x9d   : > { %v774_v42 = vmul.u32 2221713035, %v725_v43  ;;  %v677_v29 = vshrl.u32 %v628_v12, 15  ;;  %v971_v51 = vmul.f32 1.1111112, %v228_v55  ;;  %v431_v26 = vadd.s32 %v382_v44, %v1196_v2 }
  0x9e   : > { %vm920_vm13 = vcmp.lt.u32.totalorder %v871_v27, 3865470566  ;;  %v580_v40 = vxor.u32 %v531_v57, %v482_v56  ;;  %v383_v38 = vmul.u32 128, %v334_v49  ;;  %v335_v36 = vadd.s32 %v1198_v3, %v282_v4 }
  0x9f   : > { %v1018_v8 = vsel %vm920_vm13, %v969_v7, 0.0  ;;  %v823_v63 = vshrl.u32 %v774_v42, 16  ;;  %v726_v11 = vxor.u32 %v677_v29, %v628_v12  ;;  %v483_v37 = vadd.s32 %v1220_v14, %v431_v26 }
  0xa0   : > { %1067 = vst [vmem:[%s1280_s22 + $0xe8] sm:$0xff] %v1018_v8  ;;  %v229_v30 = vmax.f32 %v1361_v58, 0.0  ;;  %v629_v15 = vmul.u32 2146121005, %v580_v40  ;;  %v432_v18 = vadd.s32 %v383_v38, %v1196_v2  ;;  %v384_v47 = vmul.u32 128, %v335_v36 }
  0xa1   : > { %v872_v21 = vxor.u32 %v823_v63, %v774_v42  ;;  %v775_v28 = vmul.u32 2221713035, %v726_v11  ;;  %v532_v0 = vshrl.u32 %v483_v37, 16  ;;  %v283_v24 = vadd.s32 288, %v1194_v1 }
  0xa2   : > { %v678_v53 = vshrl.u32 %v629_v15, 15  ;;  %v230_v34 = vmax.f32 %v1364_v59, 0.0  ;;  %v484_v50 = vadd.s32 %v1220_v14, %v432_v18  ;;  %v433_v16 = vadd.s32 %v384_v47, %v1196_v2 }
  0xa3   : > { %vm921_vm14 = vcmp.lt.u32.totalorder %v872_v21, 3865470566  ;;  %v824_v13 = vshrl.u32 %v775_v28, 16  ;;  %v581_v58 = vxor.u32 %v532_v0, %v483_v37  ;;  %v336_v48 = vadd.s32 %v1198_v3, %v283_v24 }
  0xa4   : > { %v1019_v23 = vsel %vm921_vm14, %v970_v52, 0.0  ;;  %v727_v31 = vxor.u32 %v678_v53, %v629_v15  ;;  %v533_v45 = vshrl.u32 %v484_v50, 16  ;;  %v485_v17 = vadd.s32 %v1220_v14, %v433_v16 }
  0xa5   : > { %1068 = vst [vmem:[%s1280_s22 + $0xf0] sm:$0xff] %v1019_v23  ;;  %v873_v6 = vxor.u32 %v824_v13, %v775_v28  ;;  %v972_v33 = vmul.f32 1.1111112, %v229_v30  ;;  %v630_v61 = vmul.u32 2146121005, %v581_v58  ;;  %v385_v59 = vmul.u32 128, %v336_v48 }
  0xa6   : > { %v776_v25 = vmul.u32 2221713035, %v727_v31  ;;  %v582_v35 = vxor.u32 %v533_v45, %v484_v50  ;;  %v534_v55 = vshrl.u32 %v485_v17, 16  ;;  %v284_v54 = vadd.s32 296, %v1194_v1  ;;  %v1705_v31 = vld [vmem:[#allocation3_spill] sm:$0xff] }
  0xa7   : > { %vm922_vm15 = vcmp.lt.u32.totalorder %v873_v6, 3865470566  ;;  %v679_v46 = vshrl.u32 %v630_v61, 15  ;;  %v973_v19 = vmul.f32 1.1111112, %v230_v34  ;;  %v434_v32 = vadd.s32 %v385_v59, %v1196_v2 }
  0xa8   : > { %v1020_v20 = vsel %vm922_vm15, %v971_v51, 0.0  ;;  %v825_v39 = vshrl.u32 %v776_v25, 16  ;;  %v631_v7 = vmul.u32 2146121005, %v582_v35  ;;  %v583_v56 = vxor.u32 %v534_v55, %v485_v17 }
  0xa9   : > { %1069 = vst [vmem:[%s1280_s22 + $0xf8] sm:$0xff] %v1020_v20  ;;  %v728_v41 = vxor.u32 %v679_v46, %v630_v61  ;;  %v231_v43 = vmax.f32 %v1367_v60, 0.0  ;;  %v486_v52 = vadd.s32 %v1220_v14, %v434_v32  ;;  %v337_v12 = vadd.s32 %v1198_v3, %v284_v54 }
  0xaa   : > { %v874_v44 = vxor.u32 %v825_v39, %v776_v25  ;;  %v680_v27 = vshrl.u32 %v631_v7, 15  ;;  %v632_v57 = vmul.u32 2146121005, %v583_v56  ;;  %v285_v49 = vadd.s32 304, %v1194_v1 }
  0xab   : > { %v777_v4 = vmul.u32 2221713035, %v728_v41  ;;  %v232_v42 = vmax.f32 %v1370_v62, 0.0  ;;  %v535_v29 = vshrl.u32 %v486_v52, 16  ;;  %v386_v51 = vmul.u32 128, %v337_v12 }
  0xac   : > { %vm923_vm0 = vcmp.lt.u32.totalorder %v874_v44, 3865470566  ;;  %v729_v26 = vxor.u32 %v680_v27, %v631_v7  ;;  %v681_v40 = vshrl.u32 %v632_v57, 15  ;;  %v338_v60 = vadd.s32 %v1198_v3, %v285_v49  ;;  %v1706_v27 = vld [vmem:[#allocation4_spill] sm:$0xff] }
  0xad   : > { %v1021_v38 = vsel %vm923_vm0, %v972_v33, 0.0  ;;  %v826_v36 = vshrl.u32 %v777_v4, 16  ;;  %v584_v8 = vxor.u32 %v535_v29, %v486_v52  ;;  %v435_v63 = vadd.s32 %v386_v51, %v1196_v2 }
  0xae   : > { %1070 = vst [vmem:[%s1280_s22 + $0x100] sm:$0xff] %v1021_v38  ;;  %v778_v11 = vmul.u32 2221713035, %v729_v26  ;;  %v974_v37 = vmul.f32 1.1111112, %v231_v43  ;;  %v730_v30 = vxor.u32 %v681_v40, %v632_v57  ;;  %v387_v15 = vmul.u32 128, %v338_v60 }
  0xaf   : > { %v875_v18 = vxor.u32 %v826_v36, %v777_v4  ;;  %v633_v62 = vmul.u32 2146121005, %v584_v8  ;;  %v487_v47 = vadd.s32 %v1220_v14, %v435_v63  ;;  %v286_v21 = vadd.s32 312, %v1194_v1 }
  0xb0   : > { %v827_v28 = vshrl.u32 %v778_v11, 16  ;;  %v779_v0 = vmul.u32 2221713035, %v730_v30  ;;  %v975_v24 = vmul.f32 1.1111112, %v232_v42  ;;  %v436_v53 = vadd.s32 %v387_v15, %v1196_v2  ;;  %v1707_v42 = vld [vmem:[#allocation5_spill] sm:$0xff] }
  0xb1   : > { %vm924_vm1 = vcmp.lt.u32.totalorder %v875_v18, 3865470566  ;;  %v682_v34 = vshrl.u32 %v633_v62, 15  ;;  %v536_v50 = vshrl.u32 %v487_v47, 16  ;;  %v339_v16 = vadd.s32 %v1198_v3, %v286_v21 }
  0xb2   : > { %v1022_v13 = vsel %vm924_vm1, %v973_v19, 0.0  ;;  %v876_v58 = vxor.u32 %v827_v28, %v778_v11  ;;  %v828_v48 = vshrl.u32 %v779_v0, 16  ;;  %v488_v23 = vadd.s32 %v1220_v14, %v436_v53 }
  0xb3   : > { %1071 = vst [vmem:[%s1280_s22 + $0x108] sm:$0xff] %v1022_v13  ;;  %v233_v45 = vmax.f32 %v1705_v31, 0.0  ;;  %v731_v17 = vxor.u32 %v682_v34, %v633_v62  ;;  %v585_v6 = vxor.u32 %v536_v50, %v487_v47  ;;  %v388_v33 = vmul.u32 128, %v339_v16  ;;  %v1708_v13 = vld [vmem:[#allocation6_spill] sm:$0xff] }
  0xb4   : > { %vm925_vm2 = vcmp.lt.u32.totalorder %v876_v58, 3865470566  ;;  %v877_v61 = vxor.u32 %v828_v48, %v779_v0  ;;  %v537_v59 = vshrl.u32 %v488_v23, 16  ;;  %v287_v25 = vadd.s32 320, %v1194_v1 }
  0xb5   : > { %v1023_v35 = vsel %vm925_vm2, %v974_v37, 0.0  ;;  %v780_v55 = vmul.u32 2221713035, %v731_v17  ;;  %v634_v54 = vmul.u32 2146121005, %v585_v6  ;;  %v437_v46 = vadd.s32 %v388_v33, %v1196_v2 }
  0xb6   : > { %1072 = vst [vmem:[%s1280_s22 + $0x110] sm:$0xff] %v1023_v35  ;;  %vm926_vm3 = vcmp.lt.u32.totalorder %v877_v61, 3865470566  ;;  %v586_v19 = vxor.u32 %v537_v59, %v488_v23  ;;  %v340_v32 = vadd.s32 %v1198_v3, %v287_v25  ;;  %v976_v41 = vmul.f32 1.1111112, %v233_v45  ;;  %v1709_v35 = vld [vmem:[#allocation7_spill] sm:$0xff] }
  0xb7   : > { %v1024_v20 = vsel %vm926_vm3, %v975_v24, 0.0  ;;  %v829_v39 = vshrl.u32 %v780_v55, 16  ;;  %v683_v7 = vshrl.u32 %v634_v54, 15  ;;  %v489_v56 = vadd.s32 %v1220_v14, %v437_v46 }
  0xb8   : > { %1073 = vst [vmem:[%s1280_s22 + $0x118] sm:$0xff] %v1024_v20  ;;  %v635_v43 = vmul.u32 2146121005, %v586_v19  ;;  %v389_v52 = vmul.u32 128, %v340_v32  ;;  %v288_v12 = vadd.s32 328, %v1194_v1  ;;  %v234_v57 = vmax.f32 %v1706_v27, 0.0 }
  0xb9   : > { %v878_v44 = vxor.u32 %v829_v39, %v780_v55  ;;  %v732_v49 = vxor.u32 %v683_v7, %v634_v54  ;;  %v538_v4 = vshrl.u32 %v489_v56, 16  ;;  %v235_v29 = vmax.f32 %v1707_v42, 0.0 }
  0xba   : > { %v684_v51 = vshrl.u32 %v635_v43, 15  ;;  %v438_v26 = vadd.s32 %v389_v52, %v1196_v2  ;;  %v341_v40 = vadd.s32 %v1198_v3, %v288_v12  ;;  %v289_v36 = vadd.s32 336, %v1194_v1 }
  0xbb   : > { %vm927_vm4 = vcmp.lt.u32.totalorder %v878_v44, 3865470566  ;;  %v781_v60 = vmul.u32 2221713035, %v732_v49  ;;  %v587_v38 = vxor.u32 %v538_v4, %v489_v56  ;;  %v977_v15 = vmul.f32 1.1111112, %v234_v57 }
  0xbc   : > { %v1025_v8 = vsel %vm927_vm4, %v976_v41, 0.0  ;;  %v733_v63 = vxor.u32 %v684_v51, %v635_v43  ;;  %v490_v11 = vadd.s32 %v1220_v14, %v438_v26  ;;  %v390_v37 = vmul.u32 128, %v341_v40  ;;  %v1710_v40 = vld [vmem:[#allocation8_spill] sm:$0xff] }
  0xbd   : > { %1074 = vst [vmem:[%s1280_s22 + $0x120] sm:$0xff] %v1025_v8  ;;  %v830_v30 = vshrl.u32 %v781_v60, 16  ;;  %v636_v18 = vmul.u32 2146121005, %v587_v38  ;;  %v342_v62 = vadd.s32 %v1198_v3, %v289_v36  ;;  %v978_v21 = vmul.f32 1.1111112, %v235_v29 }
  0xbe   : > { %v782_v47 = vmul.u32 2221713035, %v733_v63  ;;  %v539_v28 = vshrl.u32 %v490_v11, 16  ;;  %v439_v0 = vadd.s32 %v390_v37, %v1196_v2  ;;  %v290_v50 = vadd.s32 344, %v1194_v1 }
  0xbf   : > { %v879_v24 = vxor.u32 %v830_v30, %v781_v60  ;;  %v685_v53 = vshrl.u32 %v636_v18, 15  ;;  %v391_v34 = vmul.u32 128, %v342_v62  ;;  %v236_v58 = vmax.f32 %v1708_v13, 0.0  ;;  %v1711_v30 = vld [vmem:[#allocation9_spill] sm:$0xff] }
  0xc0   : > { %v831_v16 = vshrl.u32 %v782_v47, 16  ;;  %v588_v48 = vxor.u32 %v539_v28, %v490_v11  ;;  %v491_v23 = vadd.s32 %v1220_v14, %v439_v0  ;;  %v343_v17 = vadd.s32 %v1198_v3, %v290_v50 }
  0xc1   : > { %vm928_vm5 = vcmp.lt.u32.totalorder %v879_v24, 3865470566  ;;  %v734_v31 = vxor.u32 %v685_v53, %v636_v18  ;;  %v440_v45 = vadd.s32 %v391_v34, %v1196_v2  ;;  %v237_v55 = vmax.f32 %v1709_v35, 0.0 }
  0xc2   : > { %v1026_v6 = vsel %vm928_vm5, %v977_v15, 0.0  ;;  %v880_v33 = vxor.u32 %v831_v16, %v782_v47  ;;  %v637_v61 = vmul.u32 2146121005, %v588_v48  ;;  %v540_v59 = vshrl.u32 %v491_v23, 16 }
  0xc3   : > { %1075 = vst [vmem:[%s1280_s22 + $0x128] sm:$0xff] %v1026_v6  ;;  %v783_v25 = vmul.u32 2221713035, %v734_v31  ;;  %v492_v54 = vadd.s32 %v1220_v14, %v440_v45  ;;  %v392_v46 = vmul.u32 128, %v343_v17  ;;  %v291_v20 = vadd.s32 352, %v1194_v1 }
  0xc4   : > { %vm929_vm6 = vcmp.lt.u32.totalorder %v880_v33, 3865470566  ;;  %v686_v19 = vshrl.u32 %v637_v61, 15  ;;  %v589_v32 = vxor.u32 %v540_v59, %v491_v23  ;;  %v979_v43 = vmul.f32 1.1111112, %v236_v58  ;;  %v1712_v33 = vld [vmem:[#allocation10_spill] sm:$0xff] }
  0xc5   : > { %v1027_v39 = vsel %vm929_vm6, %v978_v21, 0.0  ;;  %v832_v7 = vshrl.u32 %v783_v25, 16  ;;  %v541_v56 = vshrl.u32 %v492_v54, 16  ;;  %v441_v41 = vadd.s32 %v392_v46, %v1196_v2 }
  0xc6   : > { %1076 = vst [vmem:[%s1280_s22 + $0x130] sm:$0xff] %v1027_v39  ;;  %v735_v52 = vxor.u32 %v686_v19, %v637_v61  ;;  %v638_v12 = vmul.u32 2146121005, %v589_v32  ;;  %v344_v44 = vadd.s32 %v1198_v3, %v291_v20  ;;  %v980_v57 = vmul.f32 1.1111112, %v237_v55 }
  0xc7   : > { %v881_v27 = vxor.u32 %v832_v7, %v783_v25  ;;  %v590_v49 = vxor.u32 %v541_v56, %v492_v54  ;;  %v493_v4 = vadd.s32 %v1220_v14, %v441_v41  ;;  %v292_v26 = vadd.s32 360, %v1194_v1 }
  0xc8   : > { %v784_v42 = vmul.u32 2221713035, %v735_v52  ;;  %v687_v29 = vshrl.u32 %v638_v12, 15  ;;  %v393_v51 = vmul.u32 128, %v344_v44  ;;  %v238_v60 = vmax.f32 %v1710_v40, 0.0 }
  0xc9   : > { %vm930_vm7 = vcmp.lt.u32.totalorder %v881_v27, 3865470566  ;;  %v639_v38 = vmul.u32 2146121005, %v590_v49  ;;  %v542_v36 = vshrl.u32 %v493_v4, 16  ;;  %v239_v15 = vmax.f32 %v1711_v30, 0.0 }
  0xca   : > { %v1028_v8 = vsel %vm930_vm7, %v979_v43, 0.0  ;;  %v833_v63 = vshrl.u32 %v784_v42, 16  ;;  %v736_v11 = vxor.u32 %v687_v29, %v638_v12  ;;  %v442_v37 = vadd.s32 %v393_v51, %v1196_v2 }
  0xcb   : > { %1077 = vst [vmem:[%s1280_s22 + $0x138] sm:$0xff] %v1028_v8  ;;  %v688_v18 = vshrl.u32 %v639_v38, 15  ;;  %v591_v62 = vxor.u32 %v542_v36, %v493_v4  ;;  %v345_v47 = vadd.s32 %v1198_v3, %v292_v26  ;;  %v293_v24 = vadd.s32 368, %v1194_v1 }
  0xcc   : > { %v882_v21 = vxor.u32 %v833_v63, %v784_v42  ;;  %v785_v28 = vmul.u32 2221713035, %v736_v11  ;;  %v494_v0 = vadd.s32 %v1220_v14, %v442_v37  ;;  %v981_v53 = vmul.f32 1.1111112, %v238_v60 }
  0xcd   : > { %v737_v34 = vxor.u32 %v688_v18, %v639_v38  ;;  %v640_v50 = vmul.u32 2146121005, %v591_v62  ;;  %v394_v16 = vmul.u32 128, %v345_v47  ;;  %v346_v48 = vadd.s32 %v1198_v3, %v293_v24 }
  0xce   : > { %vm931_vm8 = vcmp.lt.u32.totalorder %v882_v21, 3865470566  ;;  %v834_v13 = vshrl.u32 %v785_v28, 16  ;;  %v543_v58 = vshrl.u32 %v494_v0, 16  ;;  %v240_v61 = vmax.f32 %v1712_v33, 0.0 }
  0xcf   : > { %v1029_v23 = vsel %vm931_vm8, %v980_v57, 0.0  ;;  %v786_v31 = vmul.u32 2221713035, %v737_v34  ;;  %v689_v45 = vshrl.u32 %v640_v50, 15  ;;  %v443_v17 = vadd.s32 %v394_v16, %v1196_v2 }
  0xd0   : > { %1078 = vst [vmem:[%s1280_s22 + $0x140] sm:$0xff] %v1029_v23  ;;  %v883_v6 = vxor.u32 %v834_v13, %v785_v28  ;;  %v592_v59 = vxor.u32 %v543_v58, %v494_v0  ;;  %v395_v25 = vmul.u32 128, %v346_v48  ;;  %v294_v46 = vadd.s32 376, %v1194_v1 }
  0xd1   : > { %v835_v35 = vshrl.u32 %v786_v31, 16  ;;  %v738_v55 = vxor.u32 %v689_v45, %v640_v50  ;;  %v495_v54 = vadd.s32 %v1220_v14, %v443_v17  ;;  %v982_v19 = vmul.f32 1.1111112, %v239_v15 }
  0xd2   : > { %vm932_vm9 = vcmp.lt.u32.totalorder %v883_v6, 3865470566  ;;  %v641_v32 = vmul.u32 2146121005, %v592_v59  ;;  %v444_v20 = vadd.s32 %v395_v25, %v1196_v2  ;;  %v983_v43 = vmul.f32 1.1111112, %v240_v61 }
  0xd3   : > { %v1030_v39 = vsel %vm932_vm9, %v981_v53, 0.0  ;;  %v884_v7 = vxor.u32 %v835_v35, %v786_v31  ;;  %v787_v56 = vmul.u32 2221713035, %v738_v55  ;;  %v544_v41 = vshrl.u32 %v495_v54, 16 }
  0xd4   : > { %1079 = vst [vmem:[%s1280_s22 + $0x148] sm:$0xff] %v1030_v39  ;;  %v690_v52 = vshrl.u32 %v641_v32, 15  ;;  %v496_v12 = vadd.s32 %v1220_v14, %v444_v20  ;;  %v347_v44 = vadd.s32 %v1198_v3, %v294_v46  ;;  %v295_v49 = vadd.s32 384, %v1194_v1 }
  0xd5   : > { %vm933_vm10 = vcmp.lt.u32.totalorder %v884_v7, 3865470566  ;;  %v836_v27 = vshrl.u32 %v787_v56, 16  ;;  %v593_v57 = vxor.u32 %v544_v41, %v495_v54  ;;  %v241_v40 = vmax.f32 %v1398_v22, 0.0 }
  0xd6   : > { %v1031_v4 = vsel %vm933_vm10, %v982_v19, 0.0  ;;  %v739_v42 = vxor.u32 %v690_v52, %v641_v32  ;;  %v545_v29 = vshrl.u32 %v496_v12, 16  ;;  %v396_v51 = vmul.u32 128, %v347_v44 }
  0xd7   : > { %1080 = vst [vmem:[%s1280_s22 + $0x150] sm:$0xff] %v1031_v4  ;;  %v885_v26 = vxor.u32 %v836_v27, %v787_v56  ;;  %v642_v60 = vmul.u32 2146121005, %v593_v57  ;;  %v348_v38 = vadd.s32 %v1198_v3, %v295_v49  ;;  %v984_v62 = vmul.f32 1.1111112, %v241_v40  ;;  %v1713_v3 = vld [vmem:[#allocation11_spill] sm:$0xff] }
  0xd8   : > { %v788_v36 = vmul.u32 2221713035, %v739_v42  ;;  %v594_v8 = vxor.u32 %v545_v29, %v496_v12  ;;  %v445_v63 = vadd.s32 %v396_v51, %v1196_v2  ;;  %v242_v28 = vmax.f32 %v1713_v3, 0.0 }
  0xd9   : > { %vm934_vm11 = vcmp.lt.u32.totalorder %v885_v26, 3865470566  ;;  %v691_v11 = vshrl.u32 %v642_v60, 15  ;;  %v397_v37 = vmul.u32 128, %v348_v38  ;;  %v243_v48 = vmax.f32 %v1404_v5, 0.0 }
  0xda   : > { %v1032_v1 = vsel %vm934_vm11, %v983_v43, 0.0  ;;  %v837_v30 = vshrl.u32 %v788_v36, 16  ;;  %v643_v15 = vmul.u32 2146121005, %v594_v8  ;;  %v497_v18 = vadd.s32 %v1220_v14, %v445_v63 }
  0xdb   : > { %1081 = vst [vmem:[%s1280_s22 + $0x158] sm:$0xff] %v1032_v1  ;;  %v740_v47 = vxor.u32 %v691_v11, %v642_v60  ;;  %v446_v22 = vadd.s32 %v397_v37, %v1196_v2  ;;  %v985_v31 = vmul.f32 1.1111112, %v242_v28  ;;  %v244_v5 = vmax.f32 %v1407_v9, 0.0 }
  0xdc   : > { %v886_v21 = vxor.u32 %v837_v30, %v788_v36  ;;  %v692_v0 = vshrl.u32 %v643_v15, 15  ;;  %v546_v24 = vshrl.u32 %v497_v18, 16  ;;  %v245_v39 = vmax.f32 %v1410_v10, 0.0 }
  0xdd   : > { %v789_v53 = vmul.u32 2221713035, %v740_v47  ;;  %v498_v34 = vadd.s32 %v1220_v14, %v446_v22  ;;  %v986_v14 = vmul.f32 1.1111112, %v243_v48  ;;  %v987_v7 = vmul.f32 1.1111112, %v244_v5 }
  0xde   : > { %vm935_vm12 = vcmp.lt.u32.totalorder %v886_v21, 3865470566  ;;  %v741_v50 = vxor.u32 %v692_v0, %v643_v15  ;;  %v595_v16 = vxor.u32 %v546_v24, %v497_v18  ;;  %v988_v52 = vmul.f32 1.1111112, %v245_v39 }
  0xdf   : > { %v1033_v13 = vsel %vm935_vm12, %v984_v62, 0.0  ;;  %v838_v58 = vshrl.u32 %v789_v53, 16  ;;  %v547_v23 = vshrl.u32 %v498_v34, 16 }
  0xe0   : > { %1082 = vst [vmem:[%s1280_s22 + $0x160] sm:$0xff] %v1033_v13  ;;  %v790_v2 = vmul.u32 2221713035, %v741_v50  ;;  %v644_v45 = vmul.u32 2146121005, %v595_v16 }
  0xe1   : > { %v887_v17 = vxor.u32 %v838_v58, %v789_v53  ;;  %v596_v6 = vxor.u32 %v547_v23, %v498_v34 }
  0xe2   : > { %v839_v33 = vshrl.u32 %v790_v2, 16  ;;  %v693_v61 = vshrl.u32 %v644_v45, 15 }
  0xe3   : > { %vm936_vm13 = vcmp.lt.u32.totalorder %v887_v17, 3865470566  ;;  %v645_v59 = vmul.u32 2146121005, %v596_v6 }
  0xe4   : > { %v1034_v25 = vsel %vm936_vm13, %v985_v31, 0.0  ;;  %v888_v35 = vxor.u32 %v839_v33, %v790_v2  ;;  %v742_v55 = vxor.u32 %v693_v61, %v644_v45 }
  0xe5   : > { %1083 = vst [vmem:[%s1280_s22 + $0x168] sm:$0xff] %v1034_v25  ;;  %v694_v54 = vshrl.u32 %v645_v59, 15 }
  0xe6   : > { %vm937_vm14 = vcmp.lt.u32.totalorder %v888_v35, 3865470566  ;;  %v791_v46 = vmul.u32 2221713035, %v742_v55 }
  0xe7   : > { %v1035_v19 = vsel %vm937_vm14, %v986_v14, 0.0  ;;  %v743_v32 = vxor.u32 %v694_v54, %v645_v59 }
  0xe8   : > { %1084 = vst [vmem:[%s1280_s22 + $0x170] sm:$0xff] %v1035_v19  ;;  %v840_v20 = vshrl.u32 %v791_v46, 16 }
  0xe9   : > { %v792_v56 = vmul.u32 2221713035, %v743_v32 }
  0xea   : > { %v889_v41 = vxor.u32 %v840_v20, %v791_v46 }
  0xeb   : > { %v841_v43 = vshrl.u32 %v792_v56, 16 }
  0xec   : > { %vm938_vm15 = vcmp.lt.u32.totalorder %v889_v41, 3865470566 }
  0xed   : > { %v1036_v12 = vsel %vm938_vm15, %v987_v7, 0.0  ;;  %v890_v44 = vxor.u32 %v841_v43, %v792_v56 }
  0xee   : > { %1085 = vst [vmem:[%s1280_s22 + $0x178] sm:$0xff] %v1036_v12 }
  0xef   : > { %vm939_vm0 = vcmp.lt.u32.totalorder %v890_v44, 3865470566 }
  0xf0   : > { %v1037_v9 = vsel %vm939_vm0, %v988_v52, 0.0 }
  0xf1   : > { %1086 = vst [vmem:[%s1280_s22 + $0x180] sm:$0xff] %v1037_v9 }
  0xf2 PF: > { %s13_s11 = sadd.s32 1, %s1166_s11  }
  0xf3   : > { %p10_p4 = scmp.ge.s32.totalorder %s13_s11, 6  }
  0xf5   :  { %12 = sbr.rel (!%p10_p4) target bundleno = 2 (0x2), region = 58 }

</bundles_post_ra>
